<compile_context>
chip_gen: v6e
topology: v6e:2x2x1
jax: 0.10.0
libtpu: 0.0.40
codegen_flags: <defaults>
</compile_context>

<pallas_src>
import functools

import jax
import jax.numpy as jnp
from jax import lax
from jax.experimental import pallas as pl
from jax.experimental.pallas import tpu as pltpu


# ---------------------------------------------------------------------------
# small helpers
# ---------------------------------------------------------------------------
def _vmem_capacity_bytes():
    try:
        cap = getattr(pltpu.get_tpu_info(), "vmem_capacity_bytes", None)
        if cap:
            return int(cap)
    except Exception:
        pass
    return 64 << 20            # conservative default (v7x per-TensorCore)


def _tensorcores_per_chip():
    try:
        kind = jax.devices()[0].device_kind.lower()
        if "v7" in kind:       # v7x: 2 TensorCores/chip; v5e/v6e: 1
            return 2
    except Exception:
        pass
    return 1


def _round_down8(x):
    return x - (x % 8) if x >= 8 else x


def _pad_lanes(d):
    return ((d + 127) // 128) * 128


# ---------------------------------------------------------------------------
# fused kernel: whole SemanticAttention in one pallas_call, z resident in VMEM
# ---------------------------------------------------------------------------
def _fused_kernel(z_hbm, w1_ref, b1_ref, w2_ref, o_ref, z_vmem, dma_sem, *,
                  num_meta, n_nodes, chunk):
    # One-shot DMA: z (M, N, D) HBM -> VMEM.  Both phases read the resident
    # copy; z never touches HBM again.
    cp = pltpu.make_async_copy(z_hbm, z_vmem, dma_sem)
    cp.start()
    cp.wait()

    w1 = w1_ref[...]
    b1 = b1_ref[...]
    hdim = w1.shape[-1]
    n_full = n_nodes // chunk
    rem = n_nodes - n_full * chunk

    def chunk_proj_sum(start, keep):
        # sum over `chunk` node rows of tanh(z[m] @ W1 + b1), per metapath.
        rows = []
        for m in range(num_meta):
            zm = z_vmem[m, pl.ds(start, chunk), :]
            h1 = jnp.tanh(
                jnp.dot(zm, w1, preferred_element_type=jnp.float32) + b1)
            if keep is not None:
                h1 = jnp.where(keep, h1, 0.0)
            rows.append(jnp.sum(h1, axis=0, keepdims=True))       # (1, H)
        return jnp.concatenate(rows, axis=0)                      # (M, H)

    # ---- phase 1: hsum over all nodes (chunked, from resident z) ----------
    def body1(c, acc):
        start = c * chunk
        if chunk % 8 == 0:
            start = pl.multiple_of(start, 8)
        return acc + chunk_proj_sum(start, None)

    hsum = lax.fori_loop(0, n_full, body1,
                         jnp.zeros((num_meta, hdim), jnp.float32))
    if rem:
        # Overlapping tail chunk: only count rows not already covered.
        start = n_nodes - chunk
        row = start + lax.broadcasted_iota(jnp.int32, (chunk, 1), 0)
        hsum = hsum + chunk_proj_sum(start, row >= n_full * chunk)

    # ---- tiny (M,) mean score + softmax, computed exactly once ------------
    w_bar = jnp.dot(hsum, w2_ref[...],
                    preferred_element_type=jnp.float32) * (1.0 / n_nodes)
    w_bar = w_bar - jnp.max(w_bar, axis=0, keepdims=True)
    e = jnp.exp(w_bar)
    beta = e / jnp.sum(e, axis=0, keepdims=True)                  # (M, 1)

    # ---- phase 2: beta-weighted sum from the resident copy ----------------
    def weighted(start):
        acc = z_vmem[0, pl.ds(start, chunk), :].astype(jnp.float32) * beta[0]
        for m in range(1, num_meta):
            acc = acc + (z_vmem[m, pl.ds(start, chunk), :]
                         .astype(jnp.float32) * beta[m])
        return acc.astype(o_ref.dtype)

    def body2(c, carry):
        start = c * chunk
        if chunk % 8 == 0:
            start = pl.multiple_of(start, 8)
        o_ref[pl.ds(start, chunk), :] = weighted(start)
        return carry

    lax.fori_loop(0, n_full, body2, 0)
    if rem:
        # Overlapping tail: rewriting already-written rows is idempotent.
        start = n_nodes - chunk
        o_ref[pl.ds(start, chunk), :] = weighted(start)


# ---------------------------------------------------------------------------
# fallback pass 1: hsum[m] = sum_n tanh(z[m, n] @ W1 + b1), streamed node tiles
# ---------------------------------------------------------------------------
def _hsum_partial_kernel(z_ref, w1_ref, b1_ref, hsum_ref, *,
                         num_meta, tile_n, n_nodes, tiles_per, mask_rows):
    @pl.when(pl.program_id(1) == 0)
    def _():
        hsum_ref[...] = jnp.zeros_like(hsum_ref)

    w1 = w1_ref[...]
    b1 = b1_ref[...]
    keep = None
    if mask_rows:   # only emitted when N % tile_n != 0 (edge-tile masking)
        base = (pl.program_id(0) * tiles_per + pl.program_id(1)) * tile_n
        row = base + lax.broadcasted_iota(jnp.int32, (tile_n, 1), 0)
        keep = row < n_nodes

    rows = []
    for m in range(num_meta):
        h1 = jnp.tanh(
            jnp.dot(z_ref[m], w1, preferred_element_type=jnp.float32) + b1)
        if keep is not None:
            h1 = jnp.where(keep, h1, 0.0)
        rows.append(jnp.sum(h1, axis=0, keepdims=True))           # (1, H)
    hsum_ref[...] += jnp.concatenate(rows, axis=0)[None]           # (1, M, H)


# ---------------------------------------------------------------------------
# fallback pass 2: lane-dense beta-weighted sum; softmax computed in-kernel
# ---------------------------------------------------------------------------
def _weighted_sum_kernel(wmean_ref, z_ref, o_ref, *, num_meta):
    w = wmean_ref[...]                                             # (M, 1)
    w = w - jnp.max(w, axis=0, keepdims=True)
    e = jnp.exp(w)
    beta = e / jnp.sum(e, axis=0, keepdims=True)                   # (M, 1)

    acc = z_ref[0].astype(jnp.float32) * beta[0]
    for m in range(1, num_meta):
        acc = acc + z_ref[m].astype(jnp.float32) * beta[m]
    o_ref[...] = acc.astype(o_ref.dtype)


# ---------------------------------------------------------------------------
# wrapper
# ---------------------------------------------------------------------------
def han_semantic_attention(z_mnd, w1, b1, w2, *,
                           max_tile_n=4096,            # fallback pass-1 tile
                           max_flat_tile=128 * 1024,   # fallback pass-2 lanes
                           max_chunk=2048,             # fused in-kernel chunk
                           force_unfused=False):
    """SemanticAttention forward.  z_mnd: (M, N, D) -> (N, D)."""
    M, N, D = z_mnd.shape
    H = w1.shape[1]
    assert w1.shape[0] == D and b1.shape == (1, H) and w2.shape == (H, 1)

    itemsize = jnp.dtype(z_mnd.dtype).itemsize
    pad_d = _pad_lanes(D)
    cap = _vmem_capacity_bytes()
    vmem_limit = int(0.9 * cap)

    # VMEM footprint of the fused design (resident z scratch is lane-padded,
    # out block budgeted double-buffered, +8 MiB slack for weights/temps).
    z_resident = M * N * pad_d * itemsize
    out_block = N * pad_d * itemsize
    fused_need = z_resident + 2 * out_block + (8 << 20)
    use_fused = (not force_unfused) and fused_need <= 0.7 * cap

    if use_fused:
        chunk = _round_down8(min(max_chunk, N))
        return pl.pallas_call(
            functools.partial(_fused_kernel,
                              num_meta=M, n_nodes=N, chunk=chunk),
            out_shape=jax.ShapeDtypeStruct((N, D), z_mnd.dtype),
            grid_spec=pltpu.PrefetchScalarGridSpec(
                num_scalar_prefetch=0,
                grid=(1,),
                in_specs=[
                    pl.BlockSpec(memory_space=pl.ANY),        # z stays in HBM
                    pl.BlockSpec((D, H), lambda i: (0, 0)),
                    pl.BlockSpec((1, H), lambda i: (0, 0)),
                    pl.BlockSpec((H, 1), lambda i: (0, 0)),
                ],
                out_specs=pl.BlockSpec((N, D), lambda i: (0, 0)),
                scratch_shapes=[
                    pltpu.VMEM((M, N, D), z_mnd.dtype),       # resident z
                    pltpu.SemaphoreType.DMA,
                ],
            ),
            compiler_params=pltpu.CompilerParams(
                dimension_semantics=("arbitrary",),
                vmem_limit_bytes=vmem_limit),
        )(z_mnd, w1, b1, w2)

    # ------------------ fallback: two-pass streaming path -------------------
    # Pass 1: hsum accumulated over large node tiles (cdiv grid + masking).
    tile_n = N if N <= max_tile_n else max_tile_n
    n_tiles = pl.cdiv(N, tile_n)
    cores = _tensorcores_per_chip()
    n_split = cores if (cores > 1 and n_tiles % cores == 0) else 1
    tiles_per = n_tiles // n_split
    mask_rows = (N % tile_n) != 0

    hsum_part = pl.pallas_call(
        functools.partial(_hsum_partial_kernel, num_meta=M, tile_n=tile_n,
                          n_nodes=N, tiles_per=tiles_per, mask_rows=mask_rows),
        out_shape=jax.ShapeDtypeStruct((n_split, M, H), jnp.float32),
        grid_spec=pltpu.PrefetchScalarGridSpec(
            num_scalar_prefetch=0,
            grid=(n_split, tiles_per),
            in_specs=[
                pl.BlockSpec((M, tile_n, D),
                             lambda c, i: (0, c * tiles_per + i, 0)),
                pl.BlockSpec((D, H), lambda c, i: (0, 0)),
                pl.BlockSpec((1, H), lambda c, i: (0, 0)),
            ],
            out_specs=pl.BlockSpec((1, M, H), lambda c, i: (c, 0, 0)),
        ),
        compiler_params=pltpu.CompilerParams(
            dimension_semantics=("parallel", "arbitrary"),
            vmem_limit_bytes=vmem_limit),
    )(z_mnd, w1, b1)

    # Tiny (M, H) combine + projection; negligible vs. the streaming passes
    # at the sizes that reach this fallback (z did not fit in VMEM).
    w_mean = (jnp.sum(hsum_part, axis=0) @ w2) * (1.0 / N)        # (M, 1)

    # Pass 2: lane-dense beta-weighted sum; softmax computed in-kernel.
    L = N * D
    tile_c = L if L <= max_flat_tile else max_flat_tile
    z_flat = z_mnd.reshape(M, 1, L)                               # free view
    out_flat = pl.pallas_call(
        functools.partial(_weighted_sum_kernel, num_meta=M),
        out_shape=jax.ShapeDtypeStruct((1, L), z_mnd.dtype),
        grid_spec=pltpu.PrefetchScalarGridSpec(
            num_scalar_prefetch=0,
            grid=(pl.cdiv(L, tile_c),),
            in_specs=[
                pl.BlockSpec((M, 1), lambda i: (0, 0)),           # w_mean
                pl.BlockSpec((M, 1, tile_c), lambda i: (0, 0, i)),
            ],
            out_specs=pl.BlockSpec((1, tile_c), lambda i: (0, i)),
        ),
        compiler_params=pltpu.CompilerParams(
            dimension_semantics=("parallel",),
            vmem_limit_bytes=vmem_limit),
    )(w_mean, z_flat)
    return out_flat.reshape(N, D)


# ---------------------------------------------------------------------------
# demo / self-check
# ---------------------------------------------------------------------------
if __name__ == "__main__":
    key = jax.random.PRNGKey(0)

    # HANLayer hyper-params (small, consistent with the module's __init__):
    in_size, out_size, num_heads = 16, 8, 4   # in_size only feeds GAT (untranslated)
    sem_hidden = 64                           # SemanticAttention hidden_size default
    N, M = 64, 4                              # nodes, meta-paths
    D = out_size * num_heads                  # 32

    k1, k2, k3, k4 = jax.random.split(key, 4)

    # Stand-in for torch.stack([gat_layers[mp](block, h).flatten(1)], dim=1).
    z_nmd = jax.random.normal(k1, (N, M, D), jnp.float32)     # PyTorch (N, M, D)
    z_mnd = jnp.transpose(z_nmd, (1, 0, 2))                   # kernel layout (M, N, D)

    # Deterministic SemanticAttention params (shapes per nn.Linear in __init__).
    bound1 = 1.0 / (D ** 0.5)
    w1 = jax.random.uniform(k2, (D, sem_hidden), jnp.float32, -bound1, bound1)
    b1 = jax.random.uniform(k3, (1, sem_hidden), jnp.float32, -bound1, bound1)
    bound2 = 1.0 / (sem_hidden ** 0.5)
    w2 = jax.random.uniform(k4, (sem_hidden, 1), jnp.float32, -bound2, bound2)

    # Pure-JAX reference of SemanticAttention.forward (PyTorch semantics).
    proj = jnp.tanh(z_nmd @ w1 + b1) @ w2     # (N, M, 1)
    w_bar = proj.mean(0)                      # (M, 1)
    beta = jax.nn.softmax(w_bar, axis=0)      # (M, 1)
    ref = (beta[None, :, :] * z_nmd).sum(1)   # (N, D)

    # Fused single-call path (z resident in VMEM — the common case).
    out_fused = jax.block_until_ready(han_semantic_attention(z_mnd, w1, b1, w2))
    assert out_fused.shape == (N, D), out_fused.shape
    err_f = float(jnp.max(jnp.abs(out_fused - ref)))
    assert jnp.allclose(out_fused, ref, rtol=1e-5, atol=1e-5), err_f

    # Streaming fallback path (exercised explicitly for coverage).
    out_tiled = jax.block_until_ready(
        han_semantic_attention(z_mnd, w1, b1, w2, force_unfused=True))
    err_t = float(jnp.max(jnp.abs(out_tiled - ref)))
    assert jnp.allclose(out_tiled, ref, rtol=1e-5, atol=1e-5), err_t

    print("KERNEL_OK")
</pallas_src>

<mosaic_0001>
module attributes {stable_mosaic.version = 11 : i64} {
  func.func @_fused_kernel(%arg0: i32, %arg1: memref<4x64x32xf32, #tpu.memory_space<any>>, %arg2: memref<32x64xf32, #tpu.memory_space<vmem>>, %arg3: memref<1x64xf32, #tpu.memory_space<vmem>>, %arg4: memref<64x1xf32, #tpu.memory_space<vmem>>, %arg5: memref<64x32xf32, #tpu.memory_space<vmem>>, %arg6: memref<4x64x32xf32, #tpu.memory_space<vmem>>, %arg7: memref<!tpu.dma_semaphore, #tpu.memory_space<semaphore_mem>>) attributes {dimension_semantics = [#tpu.dimension_semantics<arbitrary>], iteration_bounds = array<i64: 1>, scalar_prefetch = 0 : i64, scratch_operands = 2 : i64, tpu.core_type = #tpu.core_type<tc>, window_params = [{}, {pipeline_mode = #tpu.pipeline_mode<synchronous>, transform_indices = @transform_1, window_bounds = array<i64: 32, 64>}, {pipeline_mode = #tpu.pipeline_mode<synchronous>, transform_indices = @transform_2, window_bounds = array<i64: 1, 64>}, {pipeline_mode = #tpu.pipeline_mode<synchronous>, transform_indices = @transform_3, window_bounds = array<i64: 64, 1>}, {pipeline_mode = #tpu.pipeline_mode<synchronous>, transform_indices = @transform_4, window_bounds = array<i64: 64, 32>}]} {
    tpu.enqueue_dma source(%arg1 : memref<4x64x32xf32, #tpu.memory_space<any>>) target(%arg6 : memref<4x64x32xf32, #tpu.memory_space<vmem>>) target_semaphore(%arg7 : memref<!tpu.dma_semaphore, #tpu.memory_space<semaphore_mem>>)
    tpu.wait_dma2 semaphore(%arg7 : memref<!tpu.dma_semaphore, #tpu.memory_space<semaphore_mem>>) src(%arg1 : memref<4x64x32xf32, #tpu.memory_space<any>>) dst(%arg6 : memref<4x64x32xf32, #tpu.memory_space<vmem>>)
    %c0 = arith.constant 0 : index
    %c0_0 = arith.constant 0 : index
    %0 = vector.load %arg2[%c0, %c0_0] : memref<32x64xf32, #tpu.memory_space<vmem>>, vector<32x64xf32>
    %c0_1 = arith.constant 0 : index
    %c0_2 = arith.constant 0 : index
    %1 = vector.load %arg3[%c0_1, %c0_2] : memref<1x64xf32, #tpu.memory_space<vmem>>, vector<1x64xf32>
    %cst = arith.constant 0.000000e+00 : f32
    %2 = vector.broadcast %cst : f32 to vector<4x64xf32>
    %c0_i32 = arith.constant 0 : i32
    %c64_i32 = arith.constant 64 : i32
    %3 = arith.muli %c0_i32, %c64_i32 : i32
    %4 = tpu.assume_multiple %3, 8 : i32
    %c0_3 = arith.constant 0 : index
    %5 = arith.index_cast %4 : i32 to index
    %c0_4 = arith.constant 0 : index
    %6 = vector.load %arg6[%c0_3, %5, %c0_4] : memref<4x64x32xf32, #tpu.memory_space<vmem>>, vector<1x64x32xf32>
    %7 = vector.shape_cast %6 : vector<1x64x32xf32> to vector<64x32xf32>
    %cst_5 = arith.constant dense<0.000000e+00> : vector<64x64xf32>
    %8 = tpu.matmul %7, %0, %cst_5 {dimension_numbers = #tpu.dot_dimension_numbers<[1], [0], [0], [1], [0, 0, 1, 1], [], []>} : vector<64x32xf32>, vector<32x64xf32>, vector<64x64xf32> -> vector<64x64xf32>
    %9 = vector.broadcast %1 : vector<1x64xf32> to vector<64x64xf32>
    %10 = arith.addf %8, %9 : vector<64x64xf32>
    %11 = math.tanh %10 : vector<64x64xf32>
    %cst_6 = arith.constant dense<0.000000e+00> : vector<64xf32>
    %12 = vector.multi_reduction <add>, %11, %cst_6 [0] : vector<64x64xf32> to vector<64xf32>
    %13 = vector.shape_cast %12 : vector<64xf32> to vector<1x64xf32>
    %c1 = arith.constant 1 : index
    %14 = arith.index_cast %4 : i32 to index
    %c0_7 = arith.constant 0 : index
    %15 = vector.load %arg6[%c1, %14, %c0_7] : memref<4x64x32xf32, #tpu.memory_space<vmem>>, vector<1x64x32xf32>
    %16 = vector.shape_cast %15 : vector<1x64x32xf32> to vector<64x32xf32>
    %cst_8 = arith.constant dense<0.000000e+00> : vector<64x64xf32>
    %17 = tpu.matmul %16, %0, %cst_8 {dimension_numbers = #tpu.dot_dimension_numbers<[1], [0], [0], [1], [0, 0, 1, 1], [], []>} : vector<64x32xf32>, vector<32x64xf32>, vector<64x64xf32> -> vector<64x64xf32>
    %18 = vector.broadcast %1 : vector<1x64xf32> to vector<64x64xf32>
    %19 = arith.addf %17, %18 : vector<64x64xf32>
    %20 = math.tanh %19 : vector<64x64xf32>
    %cst_9 = arith.constant dense<0.000000e+00> : vector<64xf32>
    %21 = vector.multi_reduction <add>, %20, %cst_9 [0] : vector<64x64xf32> to vector<64xf32>
    %22 = vector.shape_cast %21 : vector<64xf32> to vector<1x64xf32>
    %c2 = arith.constant 2 : index
    %23 = arith.index_cast %4 : i32 to index
    %c0_10 = arith.constant 0 : index
    %24 = vector.load %arg6[%c2, %23, %c0_10] : memref<4x64x32xf32, #tpu.memory_space<vmem>>, vector<1x64x32xf32>
    %25 = vector.shape_cast %24 : vector<1x64x32xf32> to vector<64x32xf32>
    %cst_11 = arith.constant dense<0.000000e+00> : vector<64x64xf32>
    %26 = tpu.matmul %25, %0, %cst_11 {dimension_numbers = #tpu.dot_dimension_numbers<[1], [0], [0], [1], [0, 0, 1, 1], [], []>} : vector<64x32xf32>, vector<32x64xf32>, vector<64x64xf32> -> vector<64x64xf32>
    %27 = vector.broadcast %1 : vector<1x64xf32> to vector<64x64xf32>
    %28 = arith.addf %26, %27 : vector<64x64xf32>
    %29 = math.tanh %28 : vector<64x64xf32>
    %cst_12 = arith.constant dense<0.000000e+00> : vector<64xf32>
    %30 = vector.multi_reduction <add>, %29, %cst_12 [0] : vector<64x64xf32> to vector<64xf32>
    %31 = vector.shape_cast %30 : vector<64xf32> to vector<1x64xf32>
    %c3 = arith.constant 3 : index
    %32 = arith.index_cast %4 : i32 to index
    %c0_13 = arith.constant 0 : index
    %33 = vector.load %arg6[%c3, %32, %c0_13] : memref<4x64x32xf32, #tpu.memory_space<vmem>>, vector<1x64x32xf32>
    %34 = vector.shape_cast %33 : vector<1x64x32xf32> to vector<64x32xf32>
    %cst_14 = arith.constant dense<0.000000e+00> : vector<64x64xf32>
    %35 = tpu.matmul %34, %0, %cst_14 {dimension_numbers = #tpu.dot_dimension_numbers<[1], [0], [0], [1], [0, 0, 1, 1], [], []>} : vector<64x32xf32>, vector<32x64xf32>, vector<64x64xf32> -> vector<64x64xf32>
    %36 = vector.broadcast %1 : vector<1x64xf32> to vector<64x64xf32>
    %37 = arith.addf %35, %36 : vector<64x64xf32>
    %38 = math.tanh %37 : vector<64x64xf32>
    %cst_15 = arith.constant dense<0.000000e+00> : vector<64xf32>
    %39 = vector.multi_reduction <add>, %38, %cst_15 [0] : vector<64x64xf32> to vector<64xf32>
    %40 = vector.shape_cast %39 : vector<64xf32> to vector<1x64xf32>
    %41 = tpu.concatenate %13, %22, %31, %40 in 0 : vector<1x64xf32>, vector<1x64xf32>, vector<1x64xf32>, vector<1x64xf32> -> vector<4x64xf32>
    %42 = arith.addf %2, %41 : vector<4x64xf32>
    %c1_i32 = arith.constant 1 : i32
    %c0_16 = arith.constant 0 : index
    %c0_17 = arith.constant 0 : index
    %43 = vector.load %arg4[%c0_16, %c0_17] : memref<64x1xf32, #tpu.memory_space<vmem>>, vector<64x1xf32>
    %cst_18 = arith.constant dense<0.000000e+00> : vector<4x1xf32>
    %44 = tpu.matmul %42, %43, %cst_18 {dimension_numbers = #tpu.dot_dimension_numbers<[1], [0], [0], [1], [0, 0, 1, 1], [], []>} : vector<4x64xf32>, vector<64x1xf32>, vector<4x1xf32> -> vector<4x1xf32>
    %cst_19 = arith.constant 1.562500e-02 : f32
    %45 = vector.broadcast %cst_19 : f32 to vector<4x1xf32>
    %46 = arith.mulf %44, %45 : vector<4x1xf32>
    %cst_20 = arith.constant dense<0xFF800000> : vector<1xf32>
    %47 = vector.multi_reduction <maximumf>, %46, %cst_20 [0] : vector<4x1xf32> to vector<1xf32>
    %48 = vector.shape_cast %47 : vector<1xf32> to vector<1x1xf32>
    %49 = vector.broadcast %48 : vector<1x1xf32> to vector<4x1xf32>
    %50 = arith.subf %46, %49 : vector<4x1xf32>
    %51 = math.exp %50 : vector<4x1xf32>
    %cst_21 = arith.constant dense<0.000000e+00> : vector<1xf32>
    %52 = vector.multi_reduction <add>, %51, %cst_21 [0] : vector<4x1xf32> to vector<1xf32>
    %53 = vector.shape_cast %52 : vector<1xf32> to vector<1x1xf32>
    %54 = vector.broadcast %53 : vector<1x1xf32> to vector<4x1xf32>
    %55 = arith.divf %51, %54 : vector<4x1xf32>
    %c0_i32_22 = arith.constant 0 : i32
    %c64_i32_23 = arith.constant 64 : i32
    %56 = arith.muli %c0_i32_22, %c64_i32_23 : i32
    %57 = tpu.assume_multiple %56, 8 : i32
    %c0_24 = arith.constant 0 : index
    %58 = arith.index_cast %57 : i32 to index
    %c0_25 = arith.constant 0 : index
    %59 = vector.load %arg6[%c0_24, %58, %c0_25] : memref<4x64x32xf32, #tpu.memory_space<vmem>>, vector<1x64x32xf32>
    %60 = vector.shape_cast %59 : vector<1x64x32xf32> to vector<64x32xf32>
    %61 = vector.extract_strided_slice %55 {offsets = [0, 0], sizes = [1, 1], strides = [1, 1]} : vector<4x1xf32> to vector<1x1xf32>
    %62 = vector.shape_cast %61 : vector<1x1xf32> to vector<1xf32>
    %63 = vector.shape_cast %62 : vector<1xf32> to vector<1x1xf32>
    %64 = vector.broadcast %63 : vector<1x1xf32> to vector<64x32xf32>
    %65 = arith.mulf %60, %64 : vector<64x32xf32>
    %c1_26 = arith.constant 1 : index
    %66 = arith.index_cast %57 : i32 to index
    %c0_27 = arith.constant 0 : index
    %67 = vector.load %arg6[%c1_26, %66, %c0_27] : memref<4x64x32xf32, #tpu.memory_space<vmem>>, vector<1x64x32xf32>
    %68 = vector.shape_cast %67 : vector<1x64x32xf32> to vector<64x32xf32>
    %69 = vector.extract_strided_slice %55 {offsets = [1, 0], sizes = [1, 1], strides = [1, 1]} : vector<4x1xf32> to vector<1x1xf32>
    %70 = vector.shape_cast %69 : vector<1x1xf32> to vector<1xf32>
    %71 = vector.shape_cast %70 : vector<1xf32> to vector<1x1xf32>
    %72 = vector.broadcast %71 : vector<1x1xf32> to vector<64x32xf32>
    %73 = arith.mulf %68, %72 : vector<64x32xf32>
    %74 = arith.addf %65, %73 : vector<64x32xf32>
    %c2_28 = arith.constant 2 : index
    %75 = arith.index_cast %57 : i32 to index
    %c0_29 = arith.constant 0 : index
    %76 = vector.load %arg6[%c2_28, %75, %c0_29] : memref<4x64x32xf32, #tpu.memory_space<vmem>>, vector<1x64x32xf32>
    %77 = vector.shape_cast %76 : vector<1x64x32xf32> to vector<64x32xf32>
    %78 = vector.extract_strided_slice %55 {offsets = [2, 0], sizes = [1, 1], strides = [1, 1]} : vector<4x1xf32> to vector<1x1xf32>
    %79 = vector.shape_cast %78 : vector<1x1xf32> to vector<1xf32>
    %80 = vector.shape_cast %79 : vector<1xf32> to vector<1x1xf32>
    %81 = vector.broadcast %80 : vector<1x1xf32> to vector<64x32xf32>
    %82 = arith.mulf %77, %81 : vector<64x32xf32>
    %83 = arith.addf %74, %82 : vector<64x32xf32>
    %c3_30 = arith.constant 3 : index
    %84 = arith.index_cast %57 : i32 to index
    %c0_31 = arith.constant 0 : index
    %85 = vector.load %arg6[%c3_30, %84, %c0_31] : memref<4x64x32xf32, #tpu.memory_space<vmem>>, vector<1x64x32xf32>
    %86 = vector.shape_cast %85 : vector<1x64x32xf32> to vector<64x32xf32>
    %87 = vector.extract_strided_slice %55 {offsets = [3, 0], sizes = [1, 1], strides = [1, 1]} : vector<4x1xf32> to vector<1x1xf32>
    %88 = vector.shape_cast %87 : vector<1x1xf32> to vector<1xf32>
    %89 = vector.shape_cast %88 : vector<1xf32> to vector<1x1xf32>
    %90 = vector.broadcast %89 : vector<1x1xf32> to vector<64x32xf32>
    %91 = arith.mulf %86, %90 : vector<64x32xf32>
    %92 = arith.addf %83, %91 : vector<64x32xf32>
    %93 = arith.index_cast %57 : i32 to index
    %c0_32 = arith.constant 0 : index
    %94 = vector.load %arg5[%93, %c0_32] : memref<64x32xf32, #tpu.memory_space<vmem>>, vector<64x32xf32>
    tpu.vector_store %arg5[%93, %c0_32], %92 {strides = array<i32>} : memref<64x32xf32, #tpu.memory_space<vmem>>, vector<64x32xf32>,
    %c1_i32_33 = arith.constant 1 : i32
    return
  }
  func.func @transform_1(%arg0: i32) -> (i32, i32) {
    %c0_i32 = arith.constant 0 : i32
    %c0_i32_0 = arith.constant 0 : i32
    %c0_i32_1 = arith.constant 0 : i32
    return %c0_i32, %c0_i32_0 : i32, i32
  }
  func.func @transform_2(%arg0: i32) -> (i32, i32) {
    %c0_i32 = arith.constant 0 : i32
    %c0_i32_0 = arith.constant 0 : i32
    %c0_i32_1 = arith.constant 0 : i32
    return %c0_i32, %c0_i32_0 : i32, i32
  }
  func.func @transform_3(%arg0: i32) -> (i32, i32) {
    %c0_i32 = arith.constant 0 : i32
    %c0_i32_0 = arith.constant 0 : i32
    %c0_i32_1 = arith.constant 0 : i32
    return %c0_i32, %c0_i32_0 : i32, i32
  }
  func.func @transform_4(%arg0: i32) -> (i32, i32) {
    %c0_i32 = arith.constant 0 : i32
    %c0_i32_0 = arith.constant 0 : i32
    %c0_i32_1 = arith.constant 0 : i32
    return %c0_i32, %c0_i32_0 : i32, i32
  }
}

</mosaic_0001>

<bundles_post_ra>
// kernel: tpu_custom_call.1
= control target key start
LH: loop header
LB: loop body
LE: loop exit
PB: predicated region body
PF: predicated region fallthrough
CT: control target
= control target key end

     0   :  { %s1709_s0 = inlined_call_operand.vmem [shape: f32[4,64,32], index: 0, kind: input, shape index: {}]   ;;  %s1710_s1 = inlined_call_operand.vmem [shape: f32[32,64], index: 1, kind: input, shape index: {}]   ;;  %s1711_s2 = inlined_call_operand.vmem [shape: f32[1,64], index: 2, kind: input, shape index: {}]   ;;  %s1712_s3 = inlined_call_operand.vmem [shape: f32[64,1], index: 3, kind: input, shape index: {}]   ;;  %s1713_s4 = inlined_call_operand.vmem [shape: f32[64,32], index: 4, kind: output, shape index: {}]  }
   0x1   :  { %v1318_v0 = vld [vmem:[%s1709_s0] sm:$0xff]  ;;  %v1323_v1 = vld [vmem:[%s1709_s0 + $0x8] sm:$0xff]  ;;  %v1328_v2 = vld [vmem:[%s1709_s0 + $0x10] sm:$0xff] }
   0x2   :  { %v1333_v3 = vld [vmem:[%s1709_s0 + $0x18] sm:$0xff]  ;;  %v1338_v4 = vld [vmem:[%s1709_s0 + $0x20] sm:$0xff]  ;;  %v1343_v5 = vld [vmem:[%s1709_s0 + $0x28] sm:$0xff] }
   0x3   :  { %v1348_v6 = vld [vmem:[%s1709_s0 + $0x30] sm:$0xff]  ;;  %v1353_v7 = vld [vmem:[%s1709_s0 + $0x38] sm:$0xff]  ;;  %v1358_v8 = vld [vmem:[%s1709_s0 + $0x40] sm:$0xff] }
   0x4   :  { %v1363_v9 = vld [vmem:[%s1709_s0 + $0x48] sm:$0xff]  ;;  %v1368_v10 = vld [vmem:[%s1709_s0 + $0x50] sm:$0xff]  ;;  %v1373_v11 = vld [vmem:[%s1709_s0 + $0x58] sm:$0xff] }
   0x5   :  { %v1378_v12 = vld [vmem:[%s1709_s0 + $0x60] sm:$0xff]  ;;  %v1383_v13 = vld [vmem:[%s1709_s0 + $0x68] sm:$0xff]  ;;  %v1388_v14 = vld [vmem:[%s1709_s0 + $0x70] sm:$0xff] }
   0x6   :  { %v1393_v15 = vld [vmem:[%s1709_s0 + $0x78] sm:$0xff]  ;;  %v1398_v16 = vld [vmem:[%s1709_s0 + $0x80] sm:$0xff]  ;;  %v1403_v17 = vld [vmem:[%s1709_s0 + $0x88] sm:$0xff] }
   0x7   :  { %v1408_v18 = vld [vmem:[%s1709_s0 + $0x90] sm:$0xff]  ;;  %v1413_v19 = vld [vmem:[%s1709_s0 + $0x98] sm:$0xff]  ;;  %v1418_v20 = vld [vmem:[%s1709_s0 + $0xa0] sm:$0xff] }
   0x8   :  { %v1423_v21 = vld [vmem:[%s1709_s0 + $0xa8] sm:$0xff]  ;;  %v1428_v22 = vld [vmem:[%s1709_s0 + $0xb0] sm:$0xff]  ;;  %v1433_v23 = vld [vmem:[%s1709_s0 + $0xb8] sm:$0xff] }
   0x9   :  { %v1438_v24 = vld [vmem:[%s1709_s0 + $0xc0] sm:$0xff]  ;;  %v1443_v25 = vld [vmem:[%s1709_s0 + $0xc8] sm:$0xff]  ;;  %v1448_v26 = vld [vmem:[%s1709_s0 + $0xd0] sm:$0xff] }
   0xa   :  { %v1453_v27 = vld [vmem:[%s1709_s0 + $0xd8] sm:$0xff]  ;;  %v1458_v28 = vld [vmem:[%s1709_s0 + $0xe0] sm:$0xff]  ;;  %v1463_v29 = vld [vmem:[%s1709_s0 + $0xe8] sm:$0xff] }
   0xb   :  { %v1468_v30 = vld [vmem:[%s1709_s0 + $0xf0] sm:$0xff]  ;;  %v1473_v31 = vld [vmem:[%s1709_s0 + $0xf8] sm:$0xff] }
   0xc   :  { %119 = vsyncadd [#allocation3], 4096 }
   0xd   :  { %1286 = dma.done.wait [#allocation3], 4096 }
   0xe   :  { %1287 = vsyncadd [#allocation3], 4294963200  ;;  %vm143_vm0 = vcmask 261120   ;;  %v127_v32 = vld [vmem:[%s1710_s1 + $0x18] sm:$0xff]  ;;  %v126_v33 = vld [vmem:[%s1710_s1 + $0x10] sm:$0xff]  ;;  %v1288_v36 = vmov 0.0  }
   0xf   :  { %1117 = vmatprep.mubr.msk.f32.mxu0 %vm143_vm0, %v1318_v0  ;;  %1137 = vmatprep.mubr.msk.f32.mxu1 %vm143_vm0, %v1358_v8  ;;  %v125_v34 = vld [vmem:[%s1710_s1 + $0x8] sm:$0xff]  ;;  %v124_v35 = vld [vmem:[%s1710_s1] sm:$0xff]  ;;  %v821_v37 = vld [vmem:[%s1712_s3 + $0x38] sm:$0xff]  ;;  %vm1289_vm1 = vmmov 0   ;;  %vm281_vm2 = vcmask 523264   ;;  %vm807_vm3 = vcmask 1040384  }
  0x10   :  { %1109 = vmatprep.subr.mxu0 %v127_v32  ;;  %1129 = vmatprep.subr.mxu1 %v127_v32  ;;  %v820_v38 = vld [vmem:[%s1712_s3 + $0x30] sm:$0xff]  ;;  %v819_v39 = vld [vmem:[%s1712_s3 + $0x28] sm:$0xff]  ;;  %v818_v40 = vld [vmem:[%s1712_s3 + $0x20] sm:$0xff]  ;;  %vm809_vm4 = vcmask 1041408   ;;  %vm811_vm5 = vcmask 1042432   ;;  %vm896_vm6 = vcmask 3072  }
  0x11   :  { %1110 = vmatpush3.msra.mxu0 %v127_v32  ;;  %1130 = vmatpush3.msra.mxu1 %v127_v32  ;;  %v817_v41 = vld [vmem:[%s1712_s3 + $0x18] sm:$0xff]  ;;  %v816_v42 = vld [vmem:[%s1712_s3 + $0x10] sm:$0xff]  ;;  %v815_v43 = vld [vmem:[%s1712_s3 + $0x8] sm:$0xff] }
  0x12   :  { %1111 = vmatprep.subr.mxu0 %v126_v33  ;;  %1131 = vmatprep.subr.mxu1 %v126_v33  ;;  %v814_v44 = vld [vmem:[%s1712_s3] sm:$0xff] }
  0x13   :  { %1112 = vmatpush3.msra.mxu0 %v126_v33  ;;  %1132 = vmatpush3.msra.mxu1 %v126_v33  ;;  %v1578_v45 = vld [vmem:[%s1711_s2] ss:$0 sm:$0xff] }
  0x14   :  { %1113 = vmatprep.subr.mxu0 %v125_v34  ;;  %1133 = vmatprep.subr.mxu1 %v125_v34 }
  0x15   :  { %1114 = vmatpush3.msra.mxu0 %v125_v34  ;;  %1134 = vmatpush3.msra.mxu1 %v125_v34 }
  0x16   :  { %1115 = vmatprep.subr.mxu0 %v124_v35  ;;  %1135 = vmatprep.subr.mxu1 %v124_v35 }
  0x17   :  { %1116 = vmatpush3.msra.mxu0 %v124_v35  ;;  %1136 = vmatpush3.msra.mxu1 %v124_v35 }
  0x18   :  { %1118 = vmatmul.mubr.msk.f32.vlgmr.msra.gmra.mxu0 %vm143_vm0, %v1323_v1  ;;  %1138 = vmatmul.mubr.msk.f32.vlgmr.msra.gmra.mxu1 %vm143_vm0, %v1363_v9 }
  0x19   :  { %1149 = vmatprep.subr.mxu0 %v127_v32  ;;  %1169 = vmatprep.subr.mxu1 %v127_v32 }
  0x1a   :  { %1150 = vmatpush3.msra.mxu0 %v127_v32  ;;  %1170 = vmatpush3.msra.mxu1 %v127_v32 }
  0x1b   :  { %1120 = vmatprep.mubr.msk.f32.mxu0 %vm143_vm0, %v1328_v2  ;;  %1140 = vmatprep.mubr.msk.f32.mxu1 %vm143_vm0, %v1368_v10 }
  0x1c   :  { %1121 = vmatmul.mubr.msk.f32.gmra.mxu0 %vm143_vm0, %v1333_v3  ;;  %1141 = vmatmul.mubr.msk.f32.gmra.mxu1 %vm143_vm0, %v1373_v11 }
  0x1d   :  { %1151 = vmatprep.subr.mxu0 %v126_v33  ;;  %1171 = vmatprep.subr.mxu1 %v126_v33 }
  0x1e   :  { %1152 = vmatpush3.msra.mxu0 %v126_v33  ;;  %1172 = vmatpush3.msra.mxu1 %v126_v33 }
  0x1f   :  { %1123 = vmatprep.mubr.msk.f32.mxu0 %vm143_vm0, %v1338_v4  ;;  %1143 = vmatprep.mubr.msk.f32.mxu1 %vm143_vm0, %v1378_v12 }
  0x20   :  { %1124 = vmatmul.mubr.msk.f32.gmra.mxu0 %vm143_vm0, %v1343_v5  ;;  %1144 = vmatmul.mubr.msk.f32.gmra.mxu1 %vm143_vm0, %v1383_v13 }
  0x21   :  { %1153 = vmatprep.subr.mxu0 %v125_v34  ;;  %1173 = vmatprep.subr.mxu1 %v125_v34 }
  0x22   :  { %1154 = vmatpush3.msra.mxu0 %v125_v34  ;;  %1174 = vmatpush3.msra.mxu1 %v125_v34 }
  0x23   :  { %1126 = vmatprep.mubr.msk.f32.mxu0 %vm143_vm0, %v1348_v6  ;;  %1146 = vmatprep.mubr.msk.f32.mxu1 %vm143_vm0, %v1388_v14 }
  0x24   :  { %1127 = vmatmul.mubr.msk.f32.gmra.mxu0 %vm143_vm0, %v1353_v7  ;;  %1147 = vmatmul.mubr.msk.f32.gmra.mxu1 %vm143_vm0, %v1393_v15 }
  0x25   :  { %1155 = vmatprep.subr.mxu0 %v124_v35  ;;  %1175 = vmatprep.subr.mxu1 %v124_v35 }
  0x26   :  { %1156 = vmatpush3.msra.mxu0 %v124_v35  ;;  %1176 = vmatpush3.msra.mxu1 %v124_v35 }
  0x27   :  { %1157 = vmatprep.mubr.msk.f32.mxu0 %vm143_vm0, %v1398_v16  ;;  %1177 = vmatprep.mubr.msk.f32.mxu1 %vm143_vm0, %v1438_v24 }
  0x28   :  { %1158 = vmatmul.mubr.msk.f32.vlgmr.msra.gmra.mxu0 %vm143_vm0, %v1403_v17  ;;  %1178 = vmatmul.mubr.msk.f32.vlgmr.msra.gmra.mxu1 %vm143_vm0, %v1443_v25 }
  0x29   :  { %1160 = vmatprep.mubr.msk.f32.mxu0 %vm143_vm0, %v1408_v18  ;;  %1180 = vmatprep.mubr.msk.f32.mxu1 %vm143_vm0, %v1448_v26 }
  0x2a   :  { %1189 = vmatprep.subr.mxu0 %v1288_v36 }
  0x2b   :  { %1190 = vmatpush3.msra.mxu0 %v821_v37 }
  0x2c   :  { %1161 = vmatmul.mubr.msk.f32.gmra.mxu0 %vm143_vm0, %v1413_v19  ;;  %1181 = vmatmul.mubr.msk.f32.gmra.mxu1 %vm143_vm0, %v1453_v27 }
  0x2d   :  { %1163 = vmatprep.mubr.msk.f32.mxu0 %vm143_vm0, %v1418_v20  ;;  %1183 = vmatprep.mubr.msk.f32.mxu1 %vm143_vm0, %v1458_v28 }
  0x2e   :  { %1191 = vmatprep.subr.mxu0 %v1288_v36 }
  0x2f   :  { %1192 = vmatpush3.msra.mxu0 %v820_v38 }
  0x30   :  { %1164 = vmatmul.mubr.msk.f32.gmra.mxu0 %vm143_vm0, %v1423_v21  ;;  %1184 = vmatmul.mubr.msk.f32.gmra.mxu1 %vm143_vm0, %v1463_v29 }
  0x31   :  { %1166 = vmatprep.mubr.msk.f32.mxu0 %vm143_vm0, %v1428_v22  ;;  %1186 = vmatprep.mubr.msk.f32.mxu1 %vm143_vm0, %v1468_v30 }
  0x32   :  { %1193 = vmatprep.subr.mxu0 %v1288_v36 }
  0x33   :  { %1194 = vmatpush3.msra.mxu0 %v819_v39 }
  0x34   :  { %1167 = vmatmul.mubr.msk.f32.gmra.mxu0 %vm143_vm0, %v1433_v23  ;;  %1187 = vmatmul.mubr.msk.f32.gmra.mxu1 %vm143_vm0, %v1473_v31 }
  0x35   :  { %1205 = vmatprep.mubr.msk.f32.mxu0 %vm1289_vm1, %v1288_v36  ;;  %1195 = vmatprep.subr.mxu0 %v1288_v36 }
  0x36   :  { %1196 = vmatpush3.msra.mxu0 %v818_v40 }
  0x37   :  { %1197 = vmatprep.subr.mxu0 %v1288_v36 }
  0x38   :  { %1198 = vmatpush3.msra.mxu0 %v817_v41 }
  0x39   :  { %1199 = vmatprep.subr.mxu0 %v1288_v36 }
  0x3a   :  { %1200 = vmatpush3.msra.mxu0 %v816_v42 }
  0x3b   :  { %1201 = vmatprep.subr.mxu0 %v1288_v36 }
  0x3c   :  { %1202 = vmatpush3.msra.mxu0 %v815_v43 }
  0x3d   :  { %1203 = vmatprep.subr.mxu0 %v1288_v36 }
  0x3e   :  { %1204 = vmatpush3.msra.mxu0 %v814_v44 }
  0xd8   :  { %v1119_v46 = vpop.f32.mrf.mxu0  ;;  %v1139_v47 = vpop.f32.mrf.mxu1 }
  0xd9   :  { %v240_v48 = vadd.f32 %v1119_v46, %v1578_v45  ;;  %v409_v49 = vadd.f32 %v1139_v47, %v1578_v45 }
  0xda   :  { %v234_v50 = vpop.f32.mrf.mxu0  ;;  %v403_v51 = vpop.f32.mrf.mxu1 }
  0xdb   :  { %1218 = vtanh.f32 %v240_v48  ;;  %v235_v52 = vadd.f32 %v1578_v45, %v234_v50  ;;  %v404_v53 = vadd.f32 %v1578_v45, %v403_v51 }
  0xdc   :  { %1220 = vtanh.f32 %v409_v49  ;;  %v1122_v54 = vpop.f32.mrf.mxu0  ;;  %v1142_v55 = vpop.f32.mrf.mxu1 }
  0xdd   :  { %1222 = vtanh.f32 %v235_v52  ;;  %v250_v56 = vadd.f32 %v1122_v54, %v1578_v45  ;;  %v419_v57 = vadd.f32 %v1142_v55, %v1578_v45 }
  0xde   :  { %1224 = vtanh.f32 %v404_v53  ;;  %v244_v58 = vpop.f32.mrf.mxu0  ;;  %v413_v59 = vpop.f32.mrf.mxu1 }
  0xdf   :  { %1226 = vtanh.f32 %v250_v56  ;;  %v245_v60 = vadd.f32 %v1578_v45, %v244_v58  ;;  %v414_v61 = vadd.f32 %v1578_v45, %v413_v59 }
  0xe0   :  { %1228 = vtanh.f32 %v419_v57  ;;  %v1125_v62 = vpop.f32.mrf.mxu0  ;;  %v1145_v63 = vpop.f32.mrf.mxu1 }
  0xe1   :  { %1230 = vtanh.f32 %v245_v60  ;;  %v260_v32 = vadd.f32 %v1125_v62, %v1578_v45  ;;  %v429_v33 = vadd.f32 %v1145_v63, %v1578_v45 }
  0xe2   :  { %1232 = vtanh.f32 %v414_v61  ;;  %v254_v34 = vpop.f32.mrf.mxu0  ;;  %v423_v35 = vpop.f32.mrf.mxu1 }
  0xe3   :  { %1234 = vtanh.f32 %v260_v32  ;;  %v255_v36 = vadd.f32 %v1578_v45, %v254_v34  ;;  %v424_v37 = vadd.f32 %v1578_v45, %v423_v35 }
  0xe4   :  { %1236 = vtanh.f32 %v429_v33  ;;  %v1128_v38 = vpop.f32.mrf.mxu0  ;;  %v1148_v39 = vpop.f32.mrf.mxu1 }
  0xe5   :  { %1238 = vtanh.f32 %v255_v36  ;;  %v270_v40 = vadd.f32 %v1128_v38, %v1578_v45  ;;  %v439_v41 = vadd.f32 %v1148_v39, %v1578_v45 }
  0xe6   :  { %1240 = vtanh.f32 %v424_v37  ;;  %v264_v42 = vpop.f32.mrf.mxu0  ;;  %v433_v43 = vpop.f32.mrf.mxu1 }
  0xe7   :  { %1242 = vtanh.f32 %v270_v40  ;;  %v265_v44 = vadd.f32 %v1578_v45, %v264_v42  ;;  %v434_v46 = vadd.f32 %v1578_v45, %v433_v43 }
  0xe8   :  { %v1219_v47 = vpop.eup %1218  ;;  %1244 = vtanh.f32 %v439_v41  ;;  %v1159_v48 = vpop.f32.mrf.mxu0 }
  0xe9   :  { %v1179_v49 = vpop.f32.mrf.mxu1  ;;  %v1221_v50 = vpop.eup %1220  ;;  %1246 = vtanh.f32 %v265_v44  ;;  %v577_v51 = vadd.f32 %v1159_v48, %v1578_v45  ;;  %v283_v34 = vsel %vm281_vm2, %v1219_v47, 0.0 }
  0xea   :  { %v745_v52 = vadd.f32 %v1179_v49, %v1578_v45  ;;  %v1223_v53 = vpop.eup %1222  ;;  %v451_v54 = vsel %vm281_vm2, %v1221_v50, 0.0  ;;  %1248 = vtanh.f32 %v434_v46  ;;  %v571_v55 = vpop.f32.mrf.mxu0 }
  0xeb   :  { %v739_v56 = vpop.f32.mrf.mxu1  ;;  %v1225_v57 = vpop.eup %1224  ;;  %v282_v58 = vsel %vm281_vm2, %v1223_v53, 0.0  ;;  %1250 = vtanh.f32 %v577_v51  ;;  %v572_v59 = vadd.f32 %v1578_v45, %v571_v55 }
  0xec   :  { %v740_v60 = vadd.f32 %v1578_v45, %v739_v56  ;;  %v1227_v61 = vpop.eup %1226  ;;  %v450_v62 = vsel %vm281_vm2, %v1225_v57, 0.0  ;;  %1252 = vtanh.f32 %v745_v52  ;;  %v1162_v63 = vpop.f32.mrf.mxu0  ;;  %v284_v37 = vadd.f32 %v283_v34, %v282_v58 }
  0xed   :  { %v1182_v32 = vpop.f32.mrf.mxu1  ;;  %v1229_v33 = vpop.eup %1228  ;;  %1254 = vtanh.f32 %v572_v59  ;;  %v587_v35 = vadd.f32 %v1162_v63, %v1578_v45  ;;  %v452_v38 = vadd.f32 %v451_v54, %v450_v62  ;;  %v287_v53 = vsel %vm281_vm2, %v1227_v61, 0.0 }
  0xee   :  { %v1231_v36 = vpop.eup %1230  ;;  %1256 = vtanh.f32 %v740_v60  ;;  %v755_v39 = vadd.f32 %v1182_v32, %v1578_v45  ;;  %v581_v40 = vpop.f32.mrf.mxu0  ;;  %v455_v57 = vsel %vm281_vm2, %v1229_v33, 0.0 }
  0xef   :  { %v749_v41 = vpop.f32.mrf.mxu1  ;;  %v1233_v42 = vpop.eup %1232  ;;  %v285_v43 = vsel %vm281_vm2, %v1231_v36, 0.0  ;;  %1258 = vtanh.f32 %v587_v35  ;;  %v582_v44 = vadd.f32 %v1578_v45, %v581_v40 }
  0xf0   :  { %v750_v46 = vadd.f32 %v1578_v45, %v749_v41  ;;  %v1235_v47 = vpop.eup %1234  ;;  %v286_v48 = vadd.f32 %v285_v43, %v284_v37  ;;  %v453_v49 = vsel %vm281_vm2, %v1233_v42, 0.0  ;;  %1260 = vtanh.f32 %v755_v39  ;;  %v1165_v50 = vpop.f32.mrf.mxu0 }
  0xf1   :  { %v1185_v51 = vpop.f32.mrf.mxu1  ;;  %v1237_v52 = vpop.eup %1236  ;;  %v454_v54 = vadd.f32 %v453_v49, %v452_v38  ;;  %1262 = vtanh.f32 %v582_v44  ;;  %v597_v55 = vadd.f32 %v1165_v50, %v1578_v45  ;;  %v291_v41 = vsel %vm281_vm2, %v1235_v47, 0.0 }
  0xf2   :  { %v1239_v56 = vpop.eup %1238  ;;  %v288_v58 = vadd.f32 %v287_v53, %v286_v48  ;;  %1264 = vtanh.f32 %v750_v46  ;;  %v765_v59 = vadd.f32 %v1185_v51, %v1578_v45  ;;  %v591_v60 = vpop.f32.mrf.mxu0  ;;  %v459_v46 = vsel %vm281_vm2, %v1237_v52, 0.0 }
  0xf3   :  { %v759_v62 = vpop.f32.mrf.mxu1  ;;  %v1241_v63 = vpop.eup %1240  ;;  %v289_v32 = vsel %vm281_vm2, %v1239_v56, 0.0  ;;  %v456_v34 = vadd.f32 %v455_v57, %v454_v54  ;;  %1266 = vtanh.f32 %v597_v55  ;;  %v592_v61 = vadd.f32 %v1578_v45, %v591_v60 }
  0xf4   :  { %v1243_v35 = vpop.eup %1242  ;;  %v290_v36 = vadd.f32 %v289_v32, %v288_v58  ;;  %v457_v37 = vsel %vm281_vm2, %v1241_v63, 0.0  ;;  %1268 = vtanh.f32 %v765_v59  ;;  %v760_v33 = vadd.f32 %v1578_v45, %v759_v62  ;;  %v1168_v38 = vpop.f32.mrf.mxu0 }
  0xf5   :  { %v1188_v39 = vpop.f32.mrf.mxu1  ;;  %v1245_v40 = vpop.eup %1244  ;;  %v458_v42 = vadd.f32 %v457_v37, %v456_v34  ;;  %1270 = vtanh.f32 %v592_v61  ;;  %v607_v43 = vadd.f32 %v1168_v38, %v1578_v45  ;;  %v295_v63 = vsel %vm281_vm2, %v1243_v35, 0.0 }
  0xf6   :  { %v1247_v44 = vpop.eup %1246  ;;  %v292_v48 = vadd.f32 %v291_v41, %v290_v36  ;;  %1272 = vtanh.f32 %v760_v33  ;;  %v775_v49 = vadd.f32 %v1188_v39, %v1578_v45  ;;  %v601_v50 = vpop.f32.mrf.mxu0  ;;  %v463_v32 = vsel %vm281_vm2, %v1245_v40, 0.0 }
  0xf7   :  { %v769_v51 = vpop.f32.mrf.mxu1  ;;  %v1249_v53 = vpop.eup %1248  ;;  %v293_v54 = vsel %vm281_vm2, %v1247_v44, 0.0  ;;  %v460_v55 = vadd.f32 %v459_v46, %v458_v42  ;;  %1274 = vtanh.f32 %v607_v43  ;;  %v602_v47 = vadd.f32 %v1578_v45, %v601_v50 }
  0xf8   :  { %v1251_v56 = vpop.eup %1250  ;;  %v294_v57 = vadd.f32 %v293_v54, %v292_v48  ;;  %v461_v58 = vsel %vm281_vm2, %v1249_v53, 0.0  ;;  %1276 = vtanh.f32 %v775_v49  ;;  %v770_v52 = vadd.f32 %v1578_v45, %v769_v51 }
  0xf9   :  { %v1253_v59 = vpop.eup %1252  ;;  %v462_v60 = vadd.f32 %v461_v58, %v460_v55  ;;  %1278 = vtanh.f32 %v602_v47  ;;  %v619_v41 = vsel %vm281_vm2, %v1251_v56, 0.0 }
  0xfa   :  { %v1255_v62 = vpop.eup %1254  ;;  %1280 = vtanh.f32 %v770_v52  ;;  %v296_v61 = vadd.f32 %v295_v63, %v294_v57  ;;  %v787_v38 = vsel %vm281_vm2, %v1253_v59, 0.0 }
  0xfb   :  { %v1257_v34 = vpop.eup %1256  ;;  %v464_v36 = vadd.f32 %v463_v32, %v462_v60  ;;  %v618_v37 = vsel %vm281_vm2, %v1255_v62, 0.0 }
  0xfc   :  { %v1259_v33 = vpop.eup %1258  ;;  %v786_v39 = vsel %vm281_vm2, %v1257_v34, 0.0  ;;  %v620_v43 = vadd.f32 %v619_v41, %v618_v37  ;;  %v297_v35 = vrot.slane %v296_v61, 4 }
  0xfd   :  { %v1261_v45 = vpop.eup %1260  ;;  %v465_v46 = vrot.slane %v464_v36, 4  ;;  %v788_v40 = vadd.f32 %v787_v38, %v786_v39  ;;  %v623_v54 = vsel %vm281_vm2, %v1259_v33, 0.0 }
  0xfe   :  { %v1263_v42 = vpop.eup %1262  ;;  %v791_v57 = vsel %vm281_vm2, %v1261_v45, 0.0  ;;  %v298_v52 = vadd.f32 %v297_v35, %v296_v61 }
  0xff   :  { %v1265_v44 = vpop.eup %1264  ;;  %v621_v48 = vsel %vm281_vm2, %v1263_v42, 0.0  ;;  %v466_v59 = vadd.f32 %v465_v46, %v464_v36 }
 0x100   :  { %v1267_v49 = vpop.eup %1266  ;;  %v622_v50 = vadd.f32 %v621_v48, %v620_v43  ;;  %v789_v51 = vsel %vm281_vm2, %v1265_v44, 0.0  ;;  %v299_v36 = vrot.slane %v298_v52, 2 }
 0x101   :  { %v1269_v53 = vpop.eup %1268  ;;  %v790_v55 = vadd.f32 %v789_v51, %v788_v40  ;;  %v627_v38 = vsel %vm281_vm2, %v1267_v49, 0.0  ;;  %v467_v44 = vrot.slane %v466_v59, 2 }
 0x102   :  { %v1271_v47 = vpop.eup %1270  ;;  %v624_v56 = vadd.f32 %v623_v54, %v622_v50  ;;  %v795_v41 = vsel %vm281_vm2, %v1269_v53, 0.0  ;;  %v300_v54 = vadd.f32 %v299_v36, %v298_v52 }
 0x103   :  { %v1273_v58 = vpop.eup %1272  ;;  %v625_v60 = vsel %vm281_vm2, %v1271_v47, 0.0  ;;  %v792_v62 = vadd.f32 %v791_v57, %v790_v55  ;;  %v468_v55 = vadd.f32 %v467_v44, %v466_v59 }
 0x104   :  { %v1275_v63 = vpop.eup %1274  ;;  %v626_v32 = vadd.f32 %v625_v60, %v624_v56  ;;  %v793_v34 = vsel %vm281_vm2, %v1273_v58, 0.0  ;;  %v301_v56 = vrot.slane %v300_v54, 1 }
 0x105   :  { %v1277_v37 = vpop.eup %1276  ;;  %v794_v39 = vadd.f32 %v793_v34, %v792_v62  ;;  %v631_v40 = vsel %vm281_vm2, %v1275_v63, 0.0  ;;  %v469_v58 = vrot.slane %v468_v55, 1 }
 0x106   :  { %v1279_v33 = vpop.eup %1278  ;;  %v628_v42 = vadd.f32 %v627_v38, %v626_v32  ;;  %v799_v50 = vsel %vm281_vm2, %v1277_v37, 0.0  ;;  %v302_v38 = vadd.f32 %v301_v56, %v300_v54 }
 0x107   :  { %v1281_v45 = vpop.eup %1280  ;;  %v629_v43 = vsel %vm281_vm2, %v1279_v33, 0.0  ;;  %v796_v61 = vadd.f32 %v795_v41, %v794_v39  ;;  %v470_v39 = vadd.f32 %v469_v58, %v468_v55 }
 0x108   :  { %v630_v35 = vadd.f32 %v629_v43, %v628_v42  ;;  %v797_v46 = vsel %vm281_vm2, %v1281_v45, 0.0 }
 0x109   :  { %v798_v48 = vadd.f32 %v797_v46, %v796_v61  ;;  %v808_v59 = vsel %vm807_vm3, %v302_v38, %v470_v39 }
 0x10a   :  { %v632_v49 = vadd.f32 %v631_v40, %v630_v35 }
 0x10b   :  { %v800_v51 = vadd.f32 %v799_v50, %v798_v48 }
 0x10c   :  { %v633_v53 = vrot.slane %v632_v49, 4 }
 0x10d   :  { %v801_v47 = vrot.slane %v800_v51, 4 }
 0x10e   :  { %v634_v57 = vadd.f32 %v633_v53, %v632_v49 }
 0x10f   :  { %v802_v60 = vadd.f32 %v801_v47, %v800_v51 }
 0x110   :  { %v635_v62 = vrot.slane %v634_v57, 2 }
 0x111   :  { %v803_v32 = vrot.slane %v802_v60, 2 }
 0x112   :  { %v636_v34 = vadd.f32 %v635_v62, %v634_v57 }
 0x113   :  { %v804_v33 = vadd.f32 %v803_v32, %v802_v60 }
 0x114   :  { %v637_v63 = vrot.slane %v636_v34, 1 }
 0x115   :  { %v805_v41 = vrot.slane %v804_v33, 1 }
 0x116   :  { %v638_v37 = vadd.f32 %v637_v63, %v636_v34 }
 0x117   :  { %v806_v52 = vadd.f32 %v805_v41, %v804_v33 }
 0x118   :  { %v810_v42 = vsel %vm809_vm4, %v808_v59, %v638_v37 }
 0x119   :  { %v812_v45 = vsel %vm811_vm5, %v810_v42, %v806_v52 }
 0x11a   :  { %1206 = vmatmul.mubr.msk.f32.vlgmr.msra.gmra.mxu0 %vm281_vm2, %v812_v45 }
 0x1da   :  { %v891_v43 = vpop.f32.mrf.mxu0 }
 0x1db   :  { %v895_v61 = vmul.f32 0.015625, %v891_v43 }
 0x1dc   :  { %v1207_v36 = vpop.f32.mrf.mxu0 }
 0x1dd   :  { %v897_v44 = vsel %vm896_vm6, %v895_v61, -inf }
 0x1de   :  { %v898_v35 = vrot.slane %v897_v44, 4 }
 0x1e0   :  { %v899_v46 = vmax.f32 %v897_v44, %v898_v35 }
 0x1e2   :  { %v900_v40 = vrot.slane %v899_v46, 2 }
 0x1e4   :  { %v901_v48 = vmax.f32 %v899_v46, %v900_v40 }
 0x1e6   :  { %v902_v50 = vrot.slane %v901_v48, 1 }
 0x1e8   :  { %v903_v49 = vmax.f32 %v901_v48, %v902_v50 }
 0x1ea   :  { %v904_v51 = vsub.f32 %v895_v61, %v903_v49 }
 0x1ec   :  { %v905_v54 = vmul.f32 1.442695, %v904_v51 }
 0x1ee   :  { %1282 = vpow2.f32 %v905_v54 }
 0x1fb   :  { %v1283_v55 = vpop.eup %1282 }
 0x1fc   :  { %v907_v53 = vsel %vm896_vm6, %v1283_v55, 0.0 }
 0x1fd   :  { %v908_v47 = vrot.slane %v907_v53, 4 }
 0x1ff   :  { %v909_v57 = vadd.f32 %v908_v47, %v907_v53 }
 0x201   :  { %v910_v56 = vrot.slane %v909_v57, 2 }
 0x203   :  { %v911_v58 = vadd.f32 %v910_v56, %v909_v57 }
 0x205   :  { %v912_v60 = vrot.slane %v911_v58, 1 }
 0x207   :  { %v913_v62 = vadd.f32 %v912_v60, %v911_v58 }
 0x209   :  { %1284 = vrcp.f32 %v913_v62 }
 0x216   :  { %v1285_v32 = vpop.eup %1284 }
 0x217   :  { %v915_v34 = vmul.f32 %v1285_v32, %v1283_v55 }
 0x219   :  { %1208 = vpush %v915_v34  ;;  %v928_v38 = vrot.slane %v915_v34, 1  ;;  %v948_v39 = vrot.slane %v915_v34, 2  ;;  %v968_v33 = vrot.slane %v915_v34, 3 }
 0x21b   :  { %1210 = vpush %v928_v38 }
 0x21c   :  { %1212 = vpush %v948_v39 }
 0x21d   :  { %1214 = vpush %v968_v33 }
 0x24a   :  { %s1209_s2 = spop %1208 }
 0x24b   :  { %v918_v63 = vstv %s1209_s2 }
 0x24c   :  { %s1211_s3 = spop %1210  ;;  %v920_v41 = vmul.f32 %v918_v63, %v1318_v0  ;;  %v921_v37 = vmul.f32 %v918_v63, %v1323_v1  ;;  %v922_v52 = vmul.f32 %v918_v63, %v1328_v2  ;;  %v923_v59 = vmul.f32 %v918_v63, %v1333_v3 }
 0x24d   :  { %s1213_s25 = spop %1212  ;;  %v924_v42 = vmul.f32 %v918_v63, %v1338_v4  ;;  %v930_v45 = vstv %s1211_s3  ;;  %v925_v4 = vmul.f32 %v918_v63, %v1343_v5  ;;  %v926_v46 = vmul.f32 %v918_v63, %v1348_v6 }
 0x24e   :  { %v950_v43 = vstv %s1213_s25  ;;  %v932_v61 = vmul.f32 %v930_v45, %v1358_v8  ;;  %v933_v36 = vmul.f32 %v930_v45, %v1363_v9  ;;  %v934_v44 = vmul.f32 %v930_v45, %v1368_v10  ;;  %s1215_s26 = spop %1214 }
 0x24f   :  { %v935_v35 = vmul.f32 %v930_v45, %v1373_v11  ;;  %v936_v0 = vmul.f32 %v930_v45, %v1378_v12  ;;  %v937_v1 = vmul.f32 %v930_v45, %v1383_v13  ;;  %v938_v2 = vmul.f32 %v930_v45, %v1388_v14 }
 0x250   :  { %v939_v3 = vmul.f32 %v930_v45, %v1393_v15  ;;  %v927_v8 = vmul.f32 %v918_v63, %v1353_v7  ;;  %v940_v40 = vadd.f32 %v932_v61, %v920_v41  ;;  %v941_v9 = vadd.f32 %v933_v36, %v921_v37 }
 0x251   :  { %v942_v48 = vadd.f32 %v934_v44, %v922_v52  ;;  %v943_v10 = vadd.f32 %v935_v35, %v923_v59  ;;  %v944_v50 = vadd.f32 %v936_v0, %v924_v42  ;;  %v945_v11 = vadd.f32 %v937_v1, %v925_v4 }
 0x252   :  { %v946_v49 = vadd.f32 %v938_v2, %v926_v46  ;;  %v947_v12 = vadd.f32 %v939_v3, %v927_v8  ;;  %v952_v13 = vmul.f32 %v950_v43, %v1398_v16  ;;  %v953_v14 = vmul.f32 %v950_v43, %v1403_v17 }
 0x253   :  { %v954_v15 = vmul.f32 %v950_v43, %v1408_v18  ;;  %v955_v5 = vmul.f32 %v950_v43, %v1413_v19  ;;  %v956_v6 = vmul.f32 %v950_v43, %v1418_v20  ;;  %v957_v7 = vmul.f32 %v950_v43, %v1423_v21 }
 0x254   :  { %v958_v51 = vmul.f32 %v950_v43, %v1428_v22  ;;  %v959_v54 = vmul.f32 %v950_v43, %v1433_v23  ;;  %v960_v55 = vadd.f32 %v952_v13, %v940_v40  ;;  %v961_v53 = vadd.f32 %v953_v14, %v941_v9 }
 0x255   :  { %v962_v47 = vadd.f32 %v954_v15, %v942_v48  ;;  %v963_v57 = vadd.f32 %v955_v5, %v943_v10  ;;  %v964_v16 = vadd.f32 %v956_v6, %v944_v50  ;;  %v965_v56 = vadd.f32 %v957_v7, %v945_v11 }
 0x256   :  { %v966_v17 = vadd.f32 %v958_v51, %v946_v49  ;;  %v967_v58 = vadd.f32 %v959_v54, %v947_v12  ;;  %v970_v18 = vstv %s1215_s26 }
 0x257   :  { %v972_v19 = vmul.f32 %v970_v18, %v1438_v24  ;;  %v973_v20 = vmul.f32 %v970_v18, %v1443_v25  ;;  %v974_v60 = vmul.f32 %v970_v18, %v1448_v26  ;;  %v975_v21 = vmul.f32 %v970_v18, %v1453_v27 }
 0x258   :  { %v976_v22 = vmul.f32 %v970_v18, %v1458_v28  ;;  %v977_v23 = vmul.f32 %v970_v18, %v1463_v29  ;;  %v978_v62 = vmul.f32 %v970_v18, %v1468_v30  ;;  %v979_v32 = vmul.f32 %v970_v18, %v1473_v31 }
 0x259   :  { %v980_v34 = vadd.f32 %v972_v19, %v960_v55  ;;  %v981_v38 = vadd.f32 %v973_v20, %v961_v53  ;;  %v982_v39 = vadd.f32 %v974_v60, %v962_v47  ;;  %v983_v33 = vadd.f32 %v975_v21, %v963_v57 }
 0x25a   :  { %v984_v63 = vadd.f32 %v976_v22, %v964_v16  ;;  %v985_v24 = vadd.f32 %v977_v23, %v965_v56  ;;  %v986_v41 = vadd.f32 %v978_v62, %v966_v17  ;;  %v987_v25 = vadd.f32 %v979_v32, %v967_v58 }
 0x25b   :  { %988 = vst.msk [vmem:[%s1713_s4] sm:$0xff] %vm143_vm0, %v980_v34  ;;  %989 = vst.msk [vmem:[%s1713_s4 + $0x8] sm:$0xff] %vm143_vm0, %v981_v38 }
 0x25c   :  { %990 = vst.msk [vmem:[%s1713_s4 + $0x10] sm:$0xff] %vm143_vm0, %v982_v39  ;;  %991 = vst.msk [vmem:[%s1713_s4 + $0x18] sm:$0xff] %vm143_vm0, %v983_v33 }
 0x25d   :  { %992 = vst.msk [vmem:[%s1713_s4 + $0x20] sm:$0xff] %vm143_vm0, %v984_v63  ;;  %993 = vst.msk [vmem:[%s1713_s4 + $0x28] sm:$0xff] %vm143_vm0, %v985_v24 }
 0x25e   :  { %994 = vst.msk [vmem:[%s1713_s4 + $0x30] sm:$0xff] %vm143_vm0, %v986_v41  ;;  %995 = vst.msk [vmem:[%s1713_s4 + $0x38] sm:$0xff] %vm143_vm0, %v987_v25 }
 0x25f   :  { %1000 = vsyncmov [#allocation3] }
 0x262   :  { %s1001_s15 = vpop.sfrf %1000 }
 0x263   :  { %p1051_p0 = scmp.ne.s32.totalorder %s1001_s15, 0 }
 0x265   :  { %1005 = shalt.err (%p1051_p0)  }

</bundles_post_ra>
